<compile_context>
chip_gen: v7x
topology: tpu7x:2x2x1
jax: 0.10.0
libtpu: 0.0.40
codegen_flags: <defaults>
</compile_context>

<pallas_src>
import functools

import jax
import jax.numpy as jnp
from jax.experimental import pallas as pl
from jax.experimental.pallas import tpu as pltpu


def _round_up(n, m):
    return ((n + m - 1) // m) * m


def mlp_kernel(x_ref, w1_ref, b1_ref, w2_ref, b2_ref, w3_ref, b3_ref, o_ref):
    # fc1 + relu: cast x to bf16 in-kernel, f32 accumulation, f32 activations.
    x = x_ref[...].astype(jnp.bfloat16)
    h1 = jnp.dot(x, w1_ref[...], preferred_element_type=jnp.float32)
    h1 = jnp.maximum(h1 + b1_ref[...], 0.0)
    # fc2 + relu (f32 activations x bf16 weights -> promoted f32 MXU matmul).
    h2 = jnp.dot(h1, w2_ref[...], preferred_element_type=jnp.float32)
    h2 = jnp.maximum(h2 + b2_ref[...], 0.0)
    # fc3 (logits, no activation). Output slab is lane-dense (classes padded to
    # 128) and stored as bf16 to halve the dominant writeback stream.
    out = jnp.dot(h2, w3_ref[...], preferred_element_type=jnp.float32)
    o_ref[...] = (out + b3_ref[...]).astype(o_ref.dtype)


def prepare_params(w1, b1, w2, b2, w3, b3):
    """One-time padding / casting of parameters (hoisted out of the forward).

    Weights are stored transposed vs. nn.Linear, i.e. (in, out). Hidden and
    class dims are zero-padded to multiples of 128 (lane-dense tiles); padded
    rows/cols are zero so results are unchanged through the ReLUs. Weights are
    bf16 (halves resident VMEM + weight DMA); biases stay f32. The input
    feature dim of w1 is left unpadded so x needs no padding at all.
    """
    in_sz, h1_sz = w1.shape
    h2_sz, c = w3.shape
    H1, H2, CP = _round_up(h1_sz, 128), _round_up(h2_sz, 128), _round_up(c, 128)

    def pad2(a, rows, cols, dtype):
        return jnp.pad(a, ((0, rows - a.shape[0]), (0, cols - a.shape[1]))).astype(dtype)

    w1p = pad2(w1, in_sz, H1, jnp.bfloat16)
    w2p = pad2(w2, H1, H2, jnp.bfloat16)
    w3p = pad2(w3, H2, CP, jnp.bfloat16)
    b1p = pad2(b1, 1, H1, jnp.float32)
    b2p = pad2(b2, 1, H2, jnp.float32)
    b3p = pad2(b3, 1, CP, jnp.float32)
    return w1p, b1p, w2p, b2p, w3p, b3p


@functools.partial(jax.jit, static_argnames=("num_classes", "block_b"))
def nn_forward(x, w1p, b1p, w2p, b2p, w3p, b3p, *, num_classes, block_b=2048):
    """Pallas forward for NN.

    x : (B, inputSz) float32 (unpadded).
    w*p / b*p : outputs of prepare_params().
    Returns (B, num_classes) float32 logits.
    """
    B, in_sz = x.shape
    H1, H2, CP = w1p.shape[1], w2p.shape[1], w3p.shape[1]

    # Batch tile: as large as allowed (few grid steps -> low per-step overhead),
    # but at most ~half the batch rounded to the 16-row sublane pack so the
    # parallel axis has >= 2 steps (both v7x TensorCores busy). Ragged last
    # block is handled by cdiv + masked edge writes, so no batch padding.
    TB = max(16, min(block_b, _round_up(pl.cdiv(B, 2), 16)))
    grid = (pl.cdiv(B, TB),)

    # Weights/biases: constant index_map -> stay resident in VMEM across steps.
    resident = lambda shape: pl.BlockSpec(shape, lambda i: (0, 0))

    out_padded = pl.pallas_call(
        mlp_kernel,
        out_shape=jax.ShapeDtypeStruct((B, CP), jnp.bfloat16),
        grid=grid,
        in_specs=[
            pl.BlockSpec((TB, in_sz), lambda i: (i, 0)),  # x: tiled over batch
            resident((in_sz, H1)), resident((1, H1)),
            resident((H1, H2)), resident((1, H2)),
            resident((H2, CP)), resident((1, CP)),
        ],
        out_specs=pl.BlockSpec((TB, CP), lambda i: (i, 0)),
        compiler_params=pltpu.CompilerParams(
            dimension_semantics=("parallel",),  # batch axis -> both TCs
        ),
    )(x, w1p, b1p, w2p, b2p, w3p, b3p)

    return out_padded[:, :num_classes].astype(jnp.float32)


def make_params(key, input_sz, h1_sz, h2_sz, num_classes=2):
    """Deterministic init mimicking nn.Linear default (uniform in
    [-1/sqrt(fan_in), 1/sqrt(fan_in)]). Weights stored as (in, out)."""
    ks = jax.random.split(key, 6)

    def linear(kw, kb, fan_in, fan_out):
        bound = 1.0 / jnp.sqrt(fan_in)
        w = jax.random.uniform(kw, (fan_in, fan_out), jnp.float32, -bound, bound)
        b = jax.random.uniform(kb, (1, fan_out), jnp.float32, -bound, bound)
        return w, b

    w1, b1 = linear(ks[0], ks[1], input_sz, h1_sz)
    w2, b2 = linear(ks[2], ks[3], h1_sz, h2_sz)
    w3, b3 = linear(ks[4], ks[5], h2_sz, num_classes)
    return w1, b1, w2, b2, w3, b3


if __name__ == "__main__":
    B, INPUT_SZ, H1, H2, NUM_CLASSES = 256, 32, 64, 32, 2

    key = jax.random.PRNGKey(0)
    kx, kp = jax.random.split(key)
    x = jax.random.normal(kx, (B, INPUT_SZ), jnp.float32)
    params = make_params(kp, INPUT_SZ, H1, H2, NUM_CLASSES)

    # One-time parameter prep (padding + bf16 cast hoisted out of the forward).
    padded = prepare_params(*params)

    out = nn_forward(x, *padded, num_classes=NUM_CLASSES)
    out = jax.block_until_ready(out)

    # Reference check in plain JAX (f32). Kernel uses bf16 weights + bf16 output
    # store with f32 accumulation/activations -> allow bf16-level tolerance.
    w1, b1, w2, b2, w3, b3 = params
    ref = jnp.maximum(x @ w1 + b1, 0.0)
    ref = jnp.maximum(ref @ w2 + b2, 0.0)
    ref = ref @ w3 + b3

    assert out.shape == (B, NUM_CLASSES)
    assert jnp.allclose(out, ref, atol=5e-2, rtol=5e-2), (
        float(jnp.max(jnp.abs(out - ref))))

    print("KERNEL_OK")
</pallas_src>

<mosaic_0001>
module attributes {stable_mosaic.version = 11 : i64} {
  func.func @mlp_kernel(%arg0: i32, %arg1: memref<128x32xf32, #tpu.memory_space<vmem>>, %arg2: memref<32x128xbf16, #tpu.memory_space<vmem>>, %arg3: memref<1x128xf32, #tpu.memory_space<vmem>>, %arg4: memref<128x128xbf16, #tpu.memory_space<vmem>>, %arg5: memref<1x128xf32, #tpu.memory_space<vmem>>, %arg6: memref<128x128xbf16, #tpu.memory_space<vmem>>, %arg7: memref<1x128xf32, #tpu.memory_space<vmem>>, %arg8: memref<128x128xbf16, #tpu.memory_space<vmem>>) attributes {dimension_semantics = [#tpu.dimension_semantics<parallel>], iteration_bounds = array<i64: 2>, scalar_prefetch = 0 : i64, scratch_operands = 0 : i64, tpu.core_type = #tpu.core_type<tc>, window_params = [{transform_indices = @transform_0, window_bounds = array<i64: 128, 32>}, {pipeline_mode = #tpu.pipeline_mode<synchronous>, transform_indices = @transform_1, window_bounds = array<i64: 32, 128>}, {pipeline_mode = #tpu.pipeline_mode<synchronous>, transform_indices = @transform_2, window_bounds = array<i64: 1, 128>}, {pipeline_mode = #tpu.pipeline_mode<synchronous>, transform_indices = @transform_3, window_bounds = array<i64: 128, 128>}, {pipeline_mode = #tpu.pipeline_mode<synchronous>, transform_indices = @transform_4, window_bounds = array<i64: 1, 128>}, {pipeline_mode = #tpu.pipeline_mode<synchronous>, transform_indices = @transform_5, window_bounds = array<i64: 128, 128>}, {pipeline_mode = #tpu.pipeline_mode<synchronous>, transform_indices = @transform_6, window_bounds = array<i64: 1, 128>}, {transform_indices = @transform_7, window_bounds = array<i64: 128, 128>}]} {
    %c0 = arith.constant 0 : index
    %c0_0 = arith.constant 0 : index
    %0 = vector.load %arg1[%c0, %c0_0] : memref<128x32xf32, #tpu.memory_space<vmem>>, vector<128x32xf32>
    %1 = arith.truncf %0 : vector<128x32xf32> to vector<128x32xbf16>
    %c0_1 = arith.constant 0 : index
    %c0_2 = arith.constant 0 : index
    %2 = vector.load %arg2[%c0_1, %c0_2] : memref<32x128xbf16, #tpu.memory_space<vmem>>, vector<32x128xbf16>
    %cst = arith.constant dense<0.000000e+00> : vector<128x128xf32>
    %3 = tpu.matmul %1, %2, %cst {dimension_numbers = #tpu.dot_dimension_numbers<[1], [0], [0], [1], [0, 0, 1, 1], [], []>} : vector<128x32xbf16>, vector<32x128xbf16>, vector<128x128xf32> -> vector<128x128xf32>
    %c0_3 = arith.constant 0 : index
    %c0_4 = arith.constant 0 : index
    %4 = vector.load %arg3[%c0_3, %c0_4] : memref<1x128xf32, #tpu.memory_space<vmem>>, vector<1x128xf32>
    %5 = vector.broadcast %4 : vector<1x128xf32> to vector<128x128xf32>
    %6 = arith.addf %3, %5 : vector<128x128xf32>
    %cst_5 = arith.constant 0.000000e+00 : f32
    %7 = vector.broadcast %cst_5 : f32 to vector<128x128xf32>
    %8 = arith.maximumf %6, %7 : vector<128x128xf32>
    %c0_6 = arith.constant 0 : index
    %c0_7 = arith.constant 0 : index
    %9 = vector.load %arg4[%c0_6, %c0_7] : memref<128x128xbf16, #tpu.memory_space<vmem>>, vector<128x128xbf16>
    %cst_8 = arith.constant dense<0.000000e+00> : vector<128x128xf32>
    %10 = tpu.matmul %8, %9, %cst_8 {dimension_numbers = #tpu.dot_dimension_numbers<[1], [0], [0], [1], [0, 0, 1, 1], [], []>} : vector<128x128xf32>, vector<128x128xbf16>, vector<128x128xf32> -> vector<128x128xf32>
    %c0_9 = arith.constant 0 : index
    %c0_10 = arith.constant 0 : index
    %11 = vector.load %arg5[%c0_9, %c0_10] : memref<1x128xf32, #tpu.memory_space<vmem>>, vector<1x128xf32>
    %12 = vector.broadcast %11 : vector<1x128xf32> to vector<128x128xf32>
    %13 = arith.addf %10, %12 : vector<128x128xf32>
    %cst_11 = arith.constant 0.000000e+00 : f32
    %14 = vector.broadcast %cst_11 : f32 to vector<128x128xf32>
    %15 = arith.maximumf %13, %14 : vector<128x128xf32>
    %c0_12 = arith.constant 0 : index
    %c0_13 = arith.constant 0 : index
    %16 = vector.load %arg6[%c0_12, %c0_13] : memref<128x128xbf16, #tpu.memory_space<vmem>>, vector<128x128xbf16>
    %cst_14 = arith.constant dense<0.000000e+00> : vector<128x128xf32>
    %17 = tpu.matmul %15, %16, %cst_14 {dimension_numbers = #tpu.dot_dimension_numbers<[1], [0], [0], [1], [0, 0, 1, 1], [], []>} : vector<128x128xf32>, vector<128x128xbf16>, vector<128x128xf32> -> vector<128x128xf32>
    %c0_15 = arith.constant 0 : index
    %c0_16 = arith.constant 0 : index
    %18 = vector.load %arg7[%c0_15, %c0_16] : memref<1x128xf32, #tpu.memory_space<vmem>>, vector<1x128xf32>
    %19 = vector.broadcast %18 : vector<1x128xf32> to vector<128x128xf32>
    %20 = arith.addf %17, %19 : vector<128x128xf32>
    %21 = arith.truncf %20 : vector<128x128xf32> to vector<128x128xbf16>
    %c0_17 = arith.constant 0 : index
    %c0_18 = arith.constant 0 : index
    %22 = vector.load %arg8[%c0_17, %c0_18] : memref<128x128xbf16, #tpu.memory_space<vmem>>, vector<128x128xbf16>
    tpu.vector_store %arg8[%c0_17, %c0_18], %21 {strides = array<i32>} : memref<128x128xbf16, #tpu.memory_space<vmem>>, vector<128x128xbf16>,
    return
  }
  func.func @transform_0(%arg0: i32) -> (i32, i32) {
    %c0_i32 = arith.constant 0 : i32
    %c0_i32_0 = arith.constant 0 : i32
    return %arg0, %c0_i32 : i32, i32
  }
  func.func @transform_1(%arg0: i32) -> (i32, i32) {
    %c0_i32 = arith.constant 0 : i32
    %c0_i32_0 = arith.constant 0 : i32
    %c0_i32_1 = arith.constant 0 : i32
    return %c0_i32, %c0_i32_0 : i32, i32
  }
  func.func @transform_2(%arg0: i32) -> (i32, i32) {
    %c0_i32 = arith.constant 0 : i32
    %c0_i32_0 = arith.constant 0 : i32
    %c0_i32_1 = arith.constant 0 : i32
    return %c0_i32, %c0_i32_0 : i32, i32
  }
  func.func @transform_3(%arg0: i32) -> (i32, i32) {
    %c0_i32 = arith.constant 0 : i32
    %c0_i32_0 = arith.constant 0 : i32
    %c0_i32_1 = arith.constant 0 : i32
    return %c0_i32, %c0_i32_0 : i32, i32
  }
  func.func @transform_4(%arg0: i32) -> (i32, i32) {
    %c0_i32 = arith.constant 0 : i32
    %c0_i32_0 = arith.constant 0 : i32
    %c0_i32_1 = arith.constant 0 : i32
    return %c0_i32, %c0_i32_0 : i32, i32
  }
  func.func @transform_5(%arg0: i32) -> (i32, i32) {
    %c0_i32 = arith.constant 0 : i32
    %c0_i32_0 = arith.constant 0 : i32
    %c0_i32_1 = arith.constant 0 : i32
    return %c0_i32, %c0_i32_0 : i32, i32
  }
  func.func @transform_6(%arg0: i32) -> (i32, i32) {
    %c0_i32 = arith.constant 0 : i32
    %c0_i32_0 = arith.constant 0 : i32
    %c0_i32_1 = arith.constant 0 : i32
    return %c0_i32, %c0_i32_0 : i32, i32
  }
  func.func @transform_7(%arg0: i32) -> (i32, i32) {
    %c0_i32 = arith.constant 0 : i32
    %c0_i32_0 = arith.constant 0 : i32
    return %arg0, %c0_i32 : i32, i32
  }
}

</mosaic_0001>

<bundles_post_ra>
// kernel: nn_forward.1
= control target key start
LH: loop header
LB: loop body
LE: loop exit
PB: predicated region body
PF: predicated region fallthrough
CT: control target
= control target key end

     0   :  { %s1355_s24 = smov 0   ;;  %s1511_s0 = inlined_call_operand.vmem [shape: f32[256,32], index: 0, kind: input, shape index: {}]   ;;  %s1512_s1 = inlined_call_operand.vmem [shape: bf16[32,128], index: 1, kind: input, shape index: {}]   ;;  %s1513_s2 = inlined_call_operand.vmem [shape: f32[1,128], index: 2, kind: input, shape index: {}]   ;;  %s1514_s3 = inlined_call_operand.vmem [shape: bf16[128,128], index: 3, kind: input, shape index: {}]   ;;  %s1515_s4 = inlined_call_operand.vmem [shape: f32[1,128], index: 4, kind: input, shape index: {}]   ;;  %s1516_s5 = inlined_call_operand.vmem [shape: bf16[128,128], index: 5, kind: input, shape index: {}]   ;;  %s1517_s6 = inlined_call_operand.vmem [shape: f32[1,128], index: 6, kind: input, shape index: {}]   ;;  %s1518_s7 = inlined_call_operand.vmem [shape: bf16[256,128], index: 7, kind: output, shape index: {}]  }
   0x1 LB: > { %s988_s25 = sadd.s32 4294967295, %s1313_s24   ;;  %p992_p0 = scmp.ge.s32.totalorder %s1313_s24, 1  ;;  %s1313_s24 = sphi %s1355_s24, %s17_s24  }
   0x2   : > { %p238_p1 = scmp.lt.s32.totalorder %s1313_s24, 3 }
   0x4   : > { %p239_p2 = pnand %p992_p0, %p238_p1 }
   0x5   : > { %v1289_v0 = vld [vmem:[%s1512_s1] sm:$0xff] (!%p239_p2)   ;;  %s993_s28 = sshll.u32 (!%p239_p2), %s988_s25, 4  ;;  %v1290_v1 = vld [vmem:[%s1512_s1 + $0x8] sm:$0xff] (!%p239_p2)   ;;  %v1293_v4 = vld [vmem:[%s1514_s3 + $0x10] sm:$0xff] (!%p239_p2)   ;;  %vm330_vm0 = vcmask (!%p239_p2), 261120  }
   0x6   : > { %242 = sbr.rel (%p239_p2) target bundleno = 703 (0x2bf), region = 48  ;;  %p271_p3 = scmp.lt.s32.totalorder (!%p239_p2), %s993_s28, 31  ;;  %1165 = vmatprep.subr.bf16.mxu0 (!%p239_p2), %v1289_v0  ;;  %v1291_v2 = vld [vmem:[%s1514_s3] sm:$0xff] (!%p239_p2)   ;;  %v1292_v3 = vld [vmem:[%s1514_s3 + $0x8] sm:$0xff] (!%p239_p2)   ;;  %v1294_v14 = vld [vmem:[%s1514_s3 + $0x18] sm:$0xff] (!%p239_p2)  }
   0x7   : > { %1166 = vmatpush3.bf16.msra.mxu0 (!%p239_p2), %v1289_v0  ;;  %1185 = vmatprep.subr.bf16.mxu1 (!%p239_p2), %v1291_v2  ;;  %v1295_v18 = vld [vmem:[%s1514_s3 + $0x20] sm:$0xff] (!%p239_p2)   ;;  %v1296_v22 = vld [vmem:[%s1514_s3 + $0x28] sm:$0xff] (!%p239_p2)   ;;  %v1297_v32 = vld [vmem:[%s1514_s3 + $0x30] sm:$0xff] (!%p239_p2)  }
   0x8   : > { %1167 = vmatprep.subr.bf16.mxu0 (!%p239_p2), %v1290_v1  ;;  %1186 = vmatpush3.bf16.msra.mxu1 (!%p239_p2), %v1291_v2  ;;  %v1298_v33 = vld [vmem:[%s1514_s3 + $0x38] sm:$0xff] (!%p239_p2)   ;;  %v1299_v34 = vld [vmem:[%s1516_s5] sm:$0xff] (!%p239_p2)   ;;  %v1300_v35 = vld [vmem:[%s1516_s5 + $0x8] sm:$0xff] (!%p239_p2)  }
   0x9   : > { %1187 = vmatprep.subr.bf16.mxu1 (!%p239_p2), %v1292_v3  ;;  %v1301_v36 = vld [vmem:[%s1516_s5 + $0x10] sm:$0xff] (!%p239_p2)   ;;  %v1302_v37 = vld [vmem:[%s1516_s5 + $0x18] sm:$0xff] (!%p239_p2)   ;;  %v1440_v38 = vld [vmem:[%s1516_s5 + $0x20] sm:$0xff] (!%p239_p2)  }
   0xa   : > { %v1446_v39 = vld [vmem:[%s1516_s5 + $0x28] sm:$0xff] (!%p239_p2)   ;;  %v1453_v40 = vld [vmem:[%s1516_s5 + $0x30] sm:$0xff] (!%p239_p2)   ;;  %v1461_v41 = vld [vmem:[%s1513_s2] ss:$0 sm:$0xff] (!%p239_p2) }
   0xb   : > { %1168 = vmatpush3.bf16.msra.mxu0 (!%p239_p2), %v1290_v1 }
   0xc   : > { %1188 = vmatpush3.bf16.msra.mxu1 (!%p239_p2), %v1292_v3  ;;  %1225 = vmatprep.subr.bf16.mxu0 (!%p239_p2), %v1299_v34 }
   0xd   : > { %s1520_s28 = smov (!%p271_p3, %s993_s28), 31  ;;  %1189 = vmatprep.subr.bf16.mxu1 %v1293_v4 }
   0xe   : > { %s994_s12 = sshll.u32 %s1520_s28, 3  ;;  %s996_s8 = sshll.u32 %s1520_s28, 2 }
   0xf   : > { %s1381_s15 = scalar_lea.vmem %s1511_s0, %s994_s12  ;;  %s1498_s11 = scalar_lea.vmem %s1518_s7, %s996_s8 }
  0x10   : > { %v283_v5 = vld [vmem:[%s1381_s15] sm:$0xff]  ;;  %v284_v6 = vld [vmem:[%s1381_s15 + $0x8] sm:$0xff]  ;;  %v285_v7 = vld [vmem:[%s1381_s15 + $0x10] sm:$0xff]  ;;  %1190 = vmatpush3.bf16.msra.mxu1 %v1293_v4 }
  0x11   : > { %v299_v8 = vpack.c.bf16 %v284_v6, %v283_v5  ;;  %v286_v9 = vld [vmem:[%s1381_s15 + $0x18] sm:$0xff]  ;;  %v287_v10 = vld [vmem:[%s1381_s15 + $0x20] sm:$0xff]  ;;  %v288_v11 = vld [vmem:[%s1381_s15 + $0x28] sm:$0xff]  ;;  %1191 = vmatprep.subr.bf16.mxu1 %v1294_v14 }
  0x12   : > { %v300_v12 = vpack.c.bf16 %v286_v9, %v285_v7  ;;  %v301_v13 = vpack.c.bf16 %v288_v11, %v287_v10  ;;  %v289_v15 = vld [vmem:[%s1381_s15 + $0x30] sm:$0xff]  ;;  %v290_v16 = vld [vmem:[%s1381_s15 + $0x38] sm:$0xff]  ;;  %v291_v17 = vld [vmem:[%s1381_s15 + $0x40] sm:$0xff] }
  0x13   : > { %1169 = vmatprep.mubr.msk.bf16.mxu0 %vm330_vm0, %v299_v8  ;;  %v292_v19 = vld [vmem:[%s1381_s15 + $0x48] sm:$0xff]  ;;  %v302_v20 = vpack.c.bf16 %v290_v16, %v289_v15  ;;  %v293_v23 = vld [vmem:[%s1381_s15 + $0x50] sm:$0xff]  ;;  %v294_v24 = vld [vmem:[%s1381_s15 + $0x58] sm:$0xff] }
  0x14   : > { %1170 = vmatmul.mubr.msk.bf16.vlgmr.msra.gmra.mrb[0].mxu0 %vm330_vm0, %v300_v12  ;;  %v303_v21 = vpack.c.bf16 %v292_v19, %v291_v17  ;;  %1192 = vmatpush3.bf16.msra.mxu1 %v1294_v14  ;;  %v295_v25 = vld [vmem:[%s1381_s15 + $0x60] sm:$0xff]  ;;  %v296_v26 = vld [vmem:[%s1381_s15 + $0x68] sm:$0xff]  ;;  %v304_v27 = vpack.c.bf16 %v294_v24, %v293_v23  ;;  %v297_v29 = vld [vmem:[%s1381_s15 + $0x70] sm:$0xff] }
  0x15   : > { %1173 = vmatprep.mubr.msk.bf16.mxu0 %vm330_vm0, %v301_v13  ;;  %1193 = vmatprep.subr.bf16.mxu1 %v1295_v18  ;;  %v305_v28 = vpack.c.bf16 %v296_v26, %v295_v25  ;;  %v298_v30 = vld [vmem:[%s1381_s15 + $0x78] sm:$0xff] }
  0x16   : > { %v306_v31 = vpack.c.bf16 %v298_v30, %v297_v29  ;;  %1226 = vmatpush3.bf16.msra.mxu0 %v1299_v34  ;;  %v1306_v26 = vld [vmem:[%s1516_s5 + $0x38] sm:$0xff]  }
  0x17   : > { %1227 = vmatprep.subr.bf16.mxu0 %v1300_v35 }
  0x18   : > { %1194 = vmatpush3.bf16.msra.mxu1 %v1295_v18 }
  0x19   : > { %1195 = vmatprep.subr.bf16.mxu1 %v1296_v22 }
  0x1a   : > { %1228 = vmatpush3.bf16.msra.mxu0 %v1300_v35 }
  0x1b   : > { %1229 = vmatprep.subr.bf16.mxu0 %v1301_v36 }
  0x1c   : > { %1174 = vmatmul.mubr.msk.bf16.gmra.mrb[4].mxu0 %vm330_vm0, %v302_v20  ;;  %1196 = vmatpush3.bf16.msra.mxu1 %v1296_v22 }
  0x1d   : > { %1177 = vmatprep.mubr.msk.bf16.mxu0 %vm330_vm0, %v303_v21  ;;  %1197 = vmatprep.subr.bf16.mxu1 %v1297_v32 }
  0x1e   : > { %1230 = vmatpush3.bf16.msra.mxu0 %v1301_v36 }
  0x1f   : > { %1231 = vmatprep.subr.bf16.mxu0 %v1302_v37 }
  0x20   : > { %1198 = vmatpush3.bf16.msra.mxu1 %v1297_v32 }
  0x21   : > { %1199 = vmatprep.subr.bf16.mxu1 %v1298_v33 }
  0x22   : > { %1232 = vmatpush3.bf16.msra.mxu0 %v1302_v37 }
  0x23   : > { %1233 = vmatprep.subr.bf16.mxu0 %v1440_v38 }
  0x24   : > { %1178 = vmatmul.mubr.msk.bf16.gmra.mrb[8].mxu0 %vm330_vm0, %v304_v27  ;;  %1200 = vmatpush3.bf16.msra.mxu1 %v1298_v33  ;;  %v1008_v27 = vld [vmem:[%s1515_s4] ss:$0 sm:$0xff] }
  0x25   : > { %1181 = vmatprep.mubr.msk.bf16.mxu0 %vm330_vm0, %v305_v28  ;;  %1265 = vmatprep.subr.bf16.mxu1 %v1299_v34 }
  0x26   : > { %1234 = vmatpush3.bf16.msra.mxu0 %v1440_v38 }
  0x27   : > { %1235 = vmatprep.subr.bf16.mxu0 %v1446_v39 }
  0x2a   : > { %1236 = vmatpush3.bf16.msra.mxu0 %v1446_v39 }
  0x2b   : > { %1237 = vmatprep.subr.bf16.mxu0 %v1453_v40 }
  0x2c   : > { %1182 = vmatmul.mubr.msk.bf16.gmra.mrb[12].mxu0 %vm330_vm0, %v306_v31 }
  0x2e   : > { %1238 = vmatpush3.bf16.msra.mxu0 %v1453_v40 }
  0x2f   : > { %1239 = vmatprep.subr.bf16.mxu0 %v1306_v26 }
  0x32   : > { %1240 = vmatpush3.bf16.msra.mxu0 %v1306_v26 }
  0xe7   : > { %v1171_v42 = vpop.f32.mrb[0].mxu0 }
  0xe8   : > { %v389_v43 = vpop.f32.mrb[1].mxu0  ;;  %v398_v46 = vadd.f32 %v1171_v42, %v1461_v41 }
  0xe9   : > { %v1172_v44 = vpop.f32.mrb[2].mxu0  ;;  %v390_v45 = vadd.f32 %v1461_v41, %v389_v43 }
  0xea   : > { %v392_v47 = vpop.f32.mrb[3].mxu0  ;;  %v401_v50 = vadd.f32 %v1172_v44, %v1461_v41  ;;  %v454_v52 = vmax.f32 %v398_v46, 0.0 }
  0xeb   : > { %v393_v48 = vadd.f32 %v1461_v41, %v392_v47  ;;  %v452_v49 = vmax.f32 %v390_v45, 0.0 }
  0xec   : > { %v455_v55 = vmax.f32 %v401_v50, 0.0 }
  0xed   : > { %v453_v51 = vmax.f32 %v393_v48, 0.0  ;;  %1201 = vmatprep.mubr.f32.mxu1 %v452_v49 }
  0xef   : > { %v1175_v53 = vpop.f32.mrb[4].mxu0  ;;  %1202 = vmatmul.mubr.f32.vlgmr.msra.gmra.mrb[0].mxu1 %v453_v51 }
  0xf0   : > { %v405_v54 = vpop.f32.mrb[5].mxu0  ;;  %1204 = vmatprep.mubr.f32.mxu1 %v454_v52  ;;  %1273 = vmatpush3.bf16.msra.mxu1 %v1299_v34  ;;  %v414_v58 = vadd.f32 %v1175_v53, %v1461_v41 }
  0xf1   : > { %v406_v56 = vadd.f32 %v1461_v41, %v405_v54  ;;  %v1176_v57 = vpop.f32.mrb[6].mxu0  ;;  %1266 = vmatprep.subr.bf16.mxu1 %v1300_v35 }
  0xf2   : > { %v408_v59 = vpop.f32.mrb[7].mxu0  ;;  %v417_v62 = vadd.f32 %v1176_v57, %v1461_v41  ;;  %v458_v0 = vmax.f32 %v414_v58, 0.0 }
  0xf3   : > { %v456_v60 = vmax.f32 %v406_v56, 0.0  ;;  %v409_v61 = vadd.f32 %v1461_v41, %v408_v59  ;;  %1205 = vmatmul.mubr.f32.gmra.mrb[2].mxu1 %v455_v55 }
  0xf4   : > { %1274 = vmatpush3.bf16.msra.mxu1 %v1300_v35  ;;  %v459_v3 = vmax.f32 %v417_v62, 0.0 }
  0xf5   : > { %v457_v63 = vmax.f32 %v409_v61, 0.0  ;;  %1207 = vmatprep.mubr.f32.mxu1 %v456_v60  ;;  %1267 = vmatprep.subr.bf16.mxu1 %v1301_v36 }
  0xf7   : > { %v1179_v1 = vpop.f32.mrb[8].mxu0  ;;  %1208 = vmatmul.mubr.f32.gmra.mrb[4].mxu1 %v457_v63 }
  0xf8   : > { %v421_v2 = vpop.f32.mrb[9].mxu0  ;;  %1210 = vmatprep.mubr.f32.mxu1 %v458_v0  ;;  %1275 = vmatpush3.bf16.msra.mxu1 %v1301_v36  ;;  %v430_v6 = vadd.f32 %v1179_v1, %v1461_v41 }
  0xf9   : > { %v422_v4 = vadd.f32 %v1461_v41, %v421_v2  ;;  %v1180_v5 = vpop.f32.mrb[10].mxu0  ;;  %1268 = vmatprep.subr.bf16.mxu1 %v1302_v37 }
  0xfa   : > { %v424_v7 = vpop.f32.mrb[11].mxu0  ;;  %v433_v10 = vadd.f32 %v1180_v5, %v1461_v41  ;;  %v462_v12 = vmax.f32 %v430_v6, 0.0 }
  0xfb   : > { %v460_v8 = vmax.f32 %v422_v4, 0.0  ;;  %v425_v9 = vadd.f32 %v1461_v41, %v424_v7  ;;  %1211 = vmatmul.mubr.f32.gmra.mrb[6].mxu1 %v459_v3 }
  0xfc   : > { %1276 = vmatpush3.bf16.msra.mxu1 %v1302_v37  ;;  %v463_v15 = vmax.f32 %v433_v10, 0.0 }
  0xfd   : > { %v461_v11 = vmax.f32 %v425_v9, 0.0  ;;  %1213 = vmatprep.mubr.f32.mxu1 %v460_v8  ;;  %1269 = vmatprep.subr.bf16.mxu1 %v1440_v38 }
  0xff   : > { %v1183_v13 = vpop.f32.mrb[12].mxu0  ;;  %1214 = vmatmul.mubr.f32.gmra.mrb[8].mxu1 %v461_v11 }
 0x100   : > { %v437_v14 = vpop.f32.mrb[13].mxu0  ;;  %1216 = vmatprep.mubr.f32.mxu1 %v462_v12  ;;  %1277 = vmatpush3.bf16.msra.mxu1 %v1440_v38  ;;  %v446_v18 = vadd.f32 %v1183_v13, %v1461_v41  ;;  %v1017_v12 = vld [vmem:[%s1517_s6] ss:$0 sm:$0xff] }
 0x101   : > { %v438_v16 = vadd.f32 %v1461_v41, %v437_v14  ;;  %v1184_v17 = vpop.f32.mrb[14].mxu0  ;;  %1270 = vmatprep.subr.bf16.mxu1 %v1446_v39 }
 0x102   : > { %v440_v19 = vpop.f32.mrb[15].mxu0  ;;  %v449_v22 = vadd.f32 %v1184_v17, %v1461_v41  ;;  %v466_v24 = vmax.f32 %v446_v18, 0.0 }
 0x103   : > { %v464_v20 = vmax.f32 %v438_v16, 0.0  ;;  %v441_v21 = vadd.f32 %v1461_v41, %v440_v19  ;;  %1217 = vmatmul.mubr.f32.gmra.mrb[10].mxu1 %v463_v15 }
 0x104   : > { %1278 = vmatpush3.bf16.msra.mxu1 %v1446_v39  ;;  %v467_v25 = vmax.f32 %v449_v22, 0.0 }
 0x105   : > { %v465_v23 = vmax.f32 %v441_v21, 0.0  ;;  %1219 = vmatprep.mubr.f32.mxu1 %v464_v20  ;;  %1271 = vmatprep.subr.bf16.mxu1 %v1453_v40 }
 0x107   : > { %1220 = vmatmul.mubr.f32.gmra.mrb[12].mxu1 %v465_v23 }
 0x108   : > { %1222 = vmatprep.mubr.f32.mxu1 %v466_v24  ;;  %1279 = vmatpush3.bf16.msra.mxu1 %v1453_v40 }
 0x109   : > { %1272 = vmatprep.subr.bf16.mxu1 %v1306_v26 }
 0x10b   : > { %1223 = vmatmul.mubr.f32.gmra.mrb[14].mxu1 %v467_v25 }
 0x10c   : > { %1280 = vmatpush3.bf16.msra.mxu1 %v1306_v26 }
 0x1c2   : > { %v1203_v28 = vpop.f32.mrb[0].mxu1 }
 0x1c3   : > { %v579_v29 = vadd.f32 %v1203_v28, %v1008_v27  ;;  %v573_v30 = vpop.f32.mrb[1].mxu1 }
 0x1c4   : > { %v574_v31 = vadd.f32 %v1008_v27, %v573_v30 }
 0x1c5   : > { %v653_v34 = vmax.f32 %v579_v29, 0.0 }
 0x1c6   : > { %v652_v32 = vmax.f32 %v574_v31, 0.0  ;;  %v1206_v33 = vpop.f32.mrb[2].mxu1 }
 0x1c7   : > { %v589_v35 = vadd.f32 %v1206_v33, %v1008_v27  ;;  %v583_v36 = vpop.f32.mrb[3].mxu1 }
 0x1c8   : > { %v584_v37 = vadd.f32 %v1008_v27, %v583_v36  ;;  %1241 = vmatprep.mubr.f32.mxu0 %v652_v32 }
 0x1c9   : > { %1242 = vmatmul.mubr.f32.vlgmr.msra.gmra.mrb[16].mxu0 %v653_v34  ;;  %v655_v40 = vmax.f32 %v589_v35, 0.0 }
 0x1ca   : > { %v654_v38 = vmax.f32 %v584_v37, 0.0  ;;  %v1209_v39 = vpop.f32.mrb[4].mxu1 }
 0x1cb   : > { %v599_v41 = vadd.f32 %v1209_v39, %v1008_v27  ;;  %v593_v42 = vpop.f32.mrb[5].mxu1 }
 0x1cc   : > { %v594_v43 = vadd.f32 %v1008_v27, %v593_v42  ;;  %1244 = vmatprep.mubr.f32.mxu0 %v654_v38 }
 0x1cd   : > { %1245 = vmatmul.mubr.f32.gmra.mrb[18].mxu0 %v655_v40  ;;  %v657_v46 = vmax.f32 %v599_v41, 0.0 }
 0x1ce   : > { %v656_v44 = vmax.f32 %v594_v43, 0.0  ;;  %v1212_v45 = vpop.f32.mrb[6].mxu1 }
 0x1cf   : > { %v609_v47 = vadd.f32 %v1212_v45, %v1008_v27  ;;  %v603_v48 = vpop.f32.mrb[7].mxu1 }
 0x1d0   : > { %v604_v49 = vadd.f32 %v1008_v27, %v603_v48  ;;  %1247 = vmatprep.mubr.f32.mxu0 %v656_v44 }
 0x1d1   : > { %1248 = vmatmul.mubr.f32.gmra.mrb[20].mxu0 %v657_v46  ;;  %v659_v52 = vmax.f32 %v609_v47, 0.0 }
 0x1d2   : > { %v658_v50 = vmax.f32 %v604_v49, 0.0  ;;  %v1215_v51 = vpop.f32.mrb[8].mxu1 }
 0x1d3   : > { %v619_v53 = vadd.f32 %v1215_v51, %v1008_v27  ;;  %v613_v54 = vpop.f32.mrb[9].mxu1 }
 0x1d4   : > { %v614_v55 = vadd.f32 %v1008_v27, %v613_v54  ;;  %1250 = vmatprep.mubr.f32.mxu0 %v658_v50 }
 0x1d5   : > { %1251 = vmatmul.mubr.f32.gmra.mrb[22].mxu0 %v659_v52  ;;  %v661_v58 = vmax.f32 %v619_v53, 0.0 }
 0x1d6   : > { %v660_v56 = vmax.f32 %v614_v55, 0.0  ;;  %v1218_v57 = vpop.f32.mrb[10].mxu1 }
 0x1d7   : > { %v629_v59 = vadd.f32 %v1218_v57, %v1008_v27  ;;  %v623_v60 = vpop.f32.mrb[11].mxu1 }
 0x1d8   : > { %v624_v61 = vadd.f32 %v1008_v27, %v623_v60  ;;  %1253 = vmatprep.mubr.f32.mxu0 %v660_v56 }
 0x1d9   : > { %1254 = vmatmul.mubr.f32.gmra.mrb[24].mxu0 %v661_v58  ;;  %v663_v0 = vmax.f32 %v629_v59, 0.0 }
 0x1da   : > { %v662_v62 = vmax.f32 %v624_v61, 0.0  ;;  %v1221_v63 = vpop.f32.mrb[12].mxu1 }
 0x1db   : > { %v639_v1 = vadd.f32 %v1221_v63, %v1008_v27  ;;  %v633_v2 = vpop.f32.mrb[13].mxu1 }
 0x1dc   : > { %v634_v3 = vadd.f32 %v1008_v27, %v633_v2  ;;  %1256 = vmatprep.mubr.f32.mxu0 %v662_v62 }
 0x1dd   : > { %1257 = vmatmul.mubr.f32.gmra.mrb[26].mxu0 %v663_v0  ;;  %v665_v6 = vmax.f32 %v639_v1, 0.0 }
 0x1de   : > { %v664_v4 = vmax.f32 %v634_v3, 0.0  ;;  %v1224_v5 = vpop.f32.mrb[14].mxu1 }
 0x1df   : > { %v649_v7 = vadd.f32 %v1224_v5, %v1008_v27  ;;  %v643_v8 = vpop.f32.mrb[15].mxu1 }
 0x1e0   : > { %v644_v9 = vadd.f32 %v1008_v27, %v643_v8  ;;  %1259 = vmatprep.mubr.f32.mxu0 %v664_v4 }
 0x1e1   : > { %1260 = vmatmul.mubr.f32.gmra.mrb[28].mxu0 %v665_v6  ;;  %v667_v11 = vmax.f32 %v649_v7, 0.0 }
 0x1e2   : > { %v666_v10 = vmax.f32 %v644_v9, 0.0 }
 0x1e4   : > { %1262 = vmatprep.mubr.f32.mxu1 %v666_v10 }
 0x1e5   : > { %1263 = vmatmul.mubr.f32.vlgmr.msra.gmra.mrb[16].mxu1 %v667_v11 }
 0x29c   : > { %v1243_v13 = vpop.f32.mrb[16].mxu0 }
 0x29d   : > { %v779_v14 = vadd.f32 %v1243_v13, %v1017_v12  ;;  %v773_v15 = vpop.f32.mrb[17].mxu0 }
 0x29e   : > { %v774_v16 = vadd.f32 %v1017_v12, %v773_v15 }
 0x2a0   : > { %v1063_v17 = vpack.c.bf16 %v779_v14, %v774_v16  ;;  %v1246_v18 = vpop.f32.mrb[18].mxu0 }
 0x2a1   : > { %v789_v19 = vadd.f32 %v1246_v18, %v1017_v12  ;;  %v783_v20 = vpop.f32.mrb[19].mxu0 }
 0x2a2   : > { %1064 = vst [vmem:[%s1498_s11] sm:$0xff] %v1063_v17   ;;  %v784_v21 = vadd.f32 %v1017_v12, %v783_v20 }
 0x2a4   : > { %v1068_v22 = vpack.c.bf16 %v789_v19, %v784_v21  ;;  %v1249_v23 = vpop.f32.mrb[20].mxu0 }
 0x2a5   : > { %v799_v24 = vadd.f32 %v1249_v23, %v1017_v12  ;;  %v793_v25 = vpop.f32.mrb[21].mxu0 }
 0x2a6   : > { %1100 = vst [vmem:[%s1498_s11 + $0x8] sm:$0xff] %v1068_v22   ;;  %v794_v26 = vadd.f32 %v1017_v12, %v793_v25 }
 0x2a8   : > { %v1073_v27 = vpack.c.bf16 %v799_v24, %v794_v26  ;;  %v1252_v28 = vpop.f32.mrb[22].mxu0 }
 0x2a9   : > { %v809_v29 = vadd.f32 %v1252_v28, %v1017_v12  ;;  %v803_v30 = vpop.f32.mrb[23].mxu0 }
 0x2aa   : > { %1101 = vst [vmem:[%s1498_s11 + $0x10] sm:$0xff] %v1073_v27   ;;  %v804_v31 = vadd.f32 %v1017_v12, %v803_v30 }
 0x2ac   : > { %v1078_v32 = vpack.c.bf16 %v809_v29, %v804_v31  ;;  %v1255_v33 = vpop.f32.mrb[24].mxu0 }
 0x2ad   : > { %v819_v34 = vadd.f32 %v1255_v33, %v1017_v12  ;;  %v813_v35 = vpop.f32.mrb[25].mxu0 }
 0x2ae   : > { %1102 = vst [vmem:[%s1498_s11 + $0x18] sm:$0xff] %v1078_v32   ;;  %v814_v36 = vadd.f32 %v1017_v12, %v813_v35 }
 0x2b0   : > { %v1083_v37 = vpack.c.bf16 %v819_v34, %v814_v36  ;;  %v1258_v38 = vpop.f32.mrb[26].mxu0 }
 0x2b1   : > { %v829_v39 = vadd.f32 %v1258_v38, %v1017_v12  ;;  %v823_v40 = vpop.f32.mrb[27].mxu0 }
 0x2b2   : > { %1103 = vst [vmem:[%s1498_s11 + $0x20] sm:$0xff] %v1083_v37   ;;  %v824_v41 = vadd.f32 %v1017_v12, %v823_v40 }
 0x2b4   : > { %v1088_v42 = vpack.c.bf16 %v829_v39, %v824_v41  ;;  %v1261_v43 = vpop.f32.mrb[28].mxu0 }
 0x2b5   : > { %v839_v44 = vadd.f32 %v1261_v43, %v1017_v12  ;;  %v833_v45 = vpop.f32.mrb[29].mxu0 }
 0x2b6   : > { %1104 = vst [vmem:[%s1498_s11 + $0x28] sm:$0xff] %v1088_v42   ;;  %v834_v46 = vadd.f32 %v1017_v12, %v833_v45 }
 0x2b8   : > { %v1093_v47 = vpack.c.bf16 %v839_v44, %v834_v46  ;;  %v1264_v48 = vpop.f32.mrb[16].mxu1 }
 0x2b9   : > { %v849_v49 = vadd.f32 %v1264_v48, %v1017_v12  ;;  %v843_v50 = vpop.f32.mrb[17].mxu1 }
 0x2ba   : > { %1105 = vst [vmem:[%s1498_s11 + $0x30] sm:$0xff] %v1093_v47   ;;  %v844_v51 = vadd.f32 %v1017_v12, %v843_v50 }
 0x2bc   : > { %v1098_v52 = vpack.c.bf16 %v849_v49, %v844_v51 }
 0x2be   : > { %1106 = vst [vmem:[%s1498_s11 + $0x38] sm:$0xff] %v1098_v52  }
 0x2bf PF: > { %s17_s24 = sadd.s32 1, %s1313_s24  }
 0x2c0   : > { %p14_p4 = scmp.ge.s32.totalorder %s17_s24, 4  }
 0x2c2   :  { %16 = sbr.rel (!%p14_p4) target bundleno = 1 (0x1), region = 78 }

</bundles_post_ra>
